<compile_context>
chip_gen: v5e
topology: v5e:2x2
jax: 0.10.0
libtpu: 0.0.40
codegen_flags: <defaults>
</compile_context>

<pallas_src>
from functools import partial

import jax
import jax.numpy as jnp
from jax.experimental import pallas as pl
from jax.experimental.pallas import tpu as pltpu

HIDDEN = 64           # per-branch hidden width (PyTorch module uses 64)
FUSED_H = 2 * HIDDEN  # 128: exactly one vreg lane width
HEAD_N = 128          # padded, lane-dense head-output width


def _global_net_kernel(
    state_ref,   # (TB, D)      f32
    w_h_ref,     # (D, 128)     bf16  [w_pi1 | w_v1]
    b_h_ref,     # (1, 128)     f32   [b_pi1 | b_v1]
    w_o_ref,     # (128, 128)   bf16  block-diag [w_pi ; w_v], zero-padded
    b_o_ref,     # (1, 128)     f32   [b_pi, b_v, 0...]
    out_ref,     # (TB, 128)    f32   [pi | v | 0...]
):
    # bf16 operands -> single-pass MXU matmul; accumulate in f32.
    x = state_ref[...].astype(jnp.bfloat16)
    h = jnp.dot(x, w_h_ref[...], preferred_element_type=jnp.float32)
    # Bias + relu in f32 on the VPU (v5e has no native bf16 VPU).
    h = jnp.maximum(h + b_h_ref[...], 0.0)

    # Fused heads: one lane-dense MXU pass + one unmasked vector store.
    out = jnp.dot(h.astype(jnp.bfloat16), w_o_ref[...],
                  preferred_element_type=jnp.float32)
    out_ref[...] = out + b_o_ref[...]


def pack_params(params):
    """Pack per-branch torch-style (in, out) weights into fused kernel weights."""
    A = params["w_pi"].shape[1]
    assert A + 1 <= HEAD_N, "n_actions too large for the padded head width"

    w_h = jnp.concatenate([params["w_pi1"], params["w_v1"]], axis=1)   # (D, 128)
    b_h = jnp.concatenate([params["b_pi1"], params["b_v1"]], axis=1)   # (1, 128)

    w_o = jnp.zeros((FUSED_H, HEAD_N), jnp.float32)
    w_o = w_o.at[:HIDDEN, :A].set(params["w_pi"])            # pi head from cols 0:64
    w_o = w_o.at[HIDDEN:, A:A + 1].set(params["w_v"])         # v head from cols 64:128

    b_o = jnp.zeros((1, HEAD_N), jnp.float32)
    b_o = b_o.at[:, :A].set(params["b_pi"])
    b_o = b_o.at[:, A:A + 1].set(params["b_v"])

    return {
        "w_h": w_h.astype(jnp.bfloat16),   # MXU operands in bf16
        "b_h": b_h.astype(jnp.float32),    # biases stay f32 (VPU epilogue)
        "w_o": w_o.astype(jnp.bfloat16),
        "b_o": b_o.astype(jnp.float32),
        "n_actions": A,
    }


def _choose_tb(B, block_b):
    """Pick a batch tile: multiple of 8 (or full B), >=2 tiles when possible."""
    block_b = max(8, (block_b // 8) * 8)      # clamp to sublane multiple
    if B > block_b:
        return block_b
    # Small batch: split into >=2 multiple-of-8 tiles so v7x's two TensorCores
    # both get work (no-op on v5e/v6e).
    tb = ((-(-B // 2) + 7) // 8) * 8
    if tb >= B:
        return B                               # cannot legally split further
    return tb


@partial(jax.jit, static_argnames=("n_actions", "block_b"))
def global_net_forward(state, w_h, b_h, w_o, b_o, *, n_actions, block_b=8192):
    """state: (B, D) float32. Returns (pi, v) with pi (B, n_actions), v (B, 1)."""
    B, D = state.shape
    A = n_actions

    TB = _choose_tb(B, block_b)
    grid = (pl.cdiv(B, TB),)

    # Explicit VMEM budget: double-buffered state + out tiles, resident weights,
    # plus headroom.  Capped so it also fits v7x's 64 MiB physical VMEM.
    tile_bytes = (
        2 * TB * D * 4                               # streamed state (f32, 2 bufs)
        + 2 * TB * HEAD_N * 4                        # output slab (f32, 2 bufs)
        + 2 * (D * FUSED_H + FUSED_H * HEAD_N) * 2   # bf16 weights (2 bufs)
        + 2 * 2 * HEAD_N * 4                         # f32 biases (2 bufs)
    )
    vmem_limit = max(16 << 20, min(int(tile_bytes * 1.5) + (2 << 20), 48 << 20))

    out_slab = pl.pallas_call(
        _global_net_kernel,
        out_shape=jax.ShapeDtypeStruct((B, HEAD_N), jnp.float32),
        grid=grid,
        in_specs=[
            pl.BlockSpec((TB, D), lambda i: (i, 0)),            # streamed state
            pl.BlockSpec((D, FUSED_H), lambda i: (0, 0)),       # resident weights
            pl.BlockSpec((1, FUSED_H), lambda i: (0, 0)),
            pl.BlockSpec((FUSED_H, HEAD_N), lambda i: (0, 0)),
            pl.BlockSpec((1, HEAD_N), lambda i: (0, 0)),
        ],
        out_specs=pl.BlockSpec((TB, HEAD_N), lambda i: (i, 0)),
        compiler_params=pltpu.CompilerParams(
            dimension_semantics=("parallel",),   # shard batch over v7x's 2 TCs
            vmem_limit_bytes=vmem_limit,
        ),
    )(state, w_h, b_h, w_o, b_o)

    # Inside jit these slices fuse with the consumer (no extra HBM pass).
    pi = out_slab[:, :A]
    v = out_slab[:, A:A + 1]
    return pi, v


def init_params(key, input_dims, n_actions, hidden=HIDDEN):
    """Deterministic synthetic parameters; weights stored as (in, out)."""
    ks = jax.random.split(key, 8)

    def u(k, shape, fan_in):
        bound = 1.0 / jnp.sqrt(fan_in)
        return jax.random.uniform(k, shape, jnp.float32, -bound, bound)

    return {
        "w_pi1": u(ks[0], (input_dims, hidden), input_dims),
        "b_pi1": u(ks[1], (1, hidden), input_dims),
        "w_v1":  u(ks[2], (input_dims, hidden), input_dims),
        "b_v1":  u(ks[3], (1, hidden), input_dims),
        "w_pi":  u(ks[4], (hidden, n_actions), hidden),
        "b_pi":  u(ks[5], (1, n_actions), hidden),
        "w_v":   u(ks[6], (hidden, 1), hidden),
        "b_v":   u(ks[7], (1, 1), hidden),
    }


def _reference_forward(state, p):
    pi1 = jnp.maximum(state @ p["w_pi1"] + p["b_pi1"], 0.0)
    v1 = jnp.maximum(state @ p["w_v1"] + p["b_v1"], 0.0)
    return pi1 @ p["w_pi"] + p["b_pi"], v1 @ p["w_v"] + p["b_v"]


if __name__ == "__main__":
    key = jax.random.PRNGKey(0)
    k_state, k_params = jax.random.split(key)

    batch, input_dims, n_actions = 8, 32, 5
    state = jax.random.normal(k_state, (batch, input_dims), jnp.float32)
    params = init_params(k_params, input_dims, n_actions)
    packed = pack_params(params)

    pi, v = global_net_forward(
        state,
        packed["w_h"], packed["b_h"], packed["w_o"], packed["b_o"],
        n_actions=packed["n_actions"],
    )
    pi, v = jax.block_until_ready(pi), jax.block_until_ready(v)

    pi_ref, v_ref = _reference_forward(state, params)
    assert pi.shape == (batch, n_actions) and v.shape == (batch, 1)
    # bf16 MXU operands (f32 accumulation) -> relaxed tolerance vs f32 reference.
    assert jnp.allclose(pi, pi_ref, atol=2e-2, rtol=2e-2)
    assert jnp.allclose(v, v_ref, atol=2e-2, rtol=2e-2)

    print("KERNEL_OK")
</pallas_src>

<mosaic_0001>
module attributes {stable_mosaic.version = 11 : i64} {
  func.func @_global_net_kernel(%arg0: i32, %arg1: memref<8x32xf32, #tpu.memory_space<vmem>>, %arg2: memref<32x128xbf16, #tpu.memory_space<vmem>>, %arg3: memref<1x128xf32, #tpu.memory_space<vmem>>, %arg4: memref<128x128xbf16, #tpu.memory_space<vmem>>, %arg5: memref<1x128xf32, #tpu.memory_space<vmem>>, %arg6: memref<8x128xf32, #tpu.memory_space<vmem>>) attributes {dimension_semantics = [#tpu.dimension_semantics<parallel>], iteration_bounds = array<i64: 1>, scalar_prefetch = 0 : i64, scratch_operands = 0 : i64, tpu.core_type = #tpu.core_type<tc>, window_params = [{transform_indices = @transform_0, window_bounds = array<i64: 8, 32>}, {pipeline_mode = #tpu.pipeline_mode<synchronous>, transform_indices = @transform_1, window_bounds = array<i64: 32, 128>}, {pipeline_mode = #tpu.pipeline_mode<synchronous>, transform_indices = @transform_2, window_bounds = array<i64: 1, 128>}, {pipeline_mode = #tpu.pipeline_mode<synchronous>, transform_indices = @transform_3, window_bounds = array<i64: 128, 128>}, {pipeline_mode = #tpu.pipeline_mode<synchronous>, transform_indices = @transform_4, window_bounds = array<i64: 1, 128>}, {transform_indices = @transform_5, window_bounds = array<i64: 8, 128>}]} {
    %c0 = arith.constant 0 : index
    %c0_0 = arith.constant 0 : index
    %0 = vector.load %arg1[%c0, %c0_0] : memref<8x32xf32, #tpu.memory_space<vmem>>, vector<8x32xf32>
    %1 = arith.truncf %0 : vector<8x32xf32> to vector<8x32xbf16>
    %c0_1 = arith.constant 0 : index
    %c0_2 = arith.constant 0 : index
    %2 = vector.load %arg2[%c0_1, %c0_2] : memref<32x128xbf16, #tpu.memory_space<vmem>>, vector<32x128xbf16>
    %cst = arith.constant dense<0.000000e+00> : vector<8x128xf32>
    %3 = tpu.matmul %1, %2, %cst {dimension_numbers = #tpu.dot_dimension_numbers<[1], [0], [0], [1], [0, 0, 1, 1], [], []>} : vector<8x32xbf16>, vector<32x128xbf16>, vector<8x128xf32> -> vector<8x128xf32>
    %c0_3 = arith.constant 0 : index
    %c0_4 = arith.constant 0 : index
    %4 = vector.load %arg3[%c0_3, %c0_4] : memref<1x128xf32, #tpu.memory_space<vmem>>, vector<1x128xf32>
    %5 = vector.broadcast %4 : vector<1x128xf32> to vector<8x128xf32>
    %6 = arith.addf %3, %5 : vector<8x128xf32>
    %cst_5 = arith.constant 0.000000e+00 : f32
    %7 = vector.broadcast %cst_5 : f32 to vector<8x128xf32>
    %8 = arith.maximumf %6, %7 : vector<8x128xf32>
    %9 = arith.truncf %8 : vector<8x128xf32> to vector<8x128xbf16>
    %c0_6 = arith.constant 0 : index
    %c0_7 = arith.constant 0 : index
    %10 = vector.load %arg4[%c0_6, %c0_7] : memref<128x128xbf16, #tpu.memory_space<vmem>>, vector<128x128xbf16>
    %cst_8 = arith.constant dense<0.000000e+00> : vector<8x128xf32>
    %11 = tpu.matmul %9, %10, %cst_8 {dimension_numbers = #tpu.dot_dimension_numbers<[1], [0], [0], [1], [0, 0, 1, 1], [], []>} : vector<8x128xbf16>, vector<128x128xbf16>, vector<8x128xf32> -> vector<8x128xf32>
    %c0_9 = arith.constant 0 : index
    %c0_10 = arith.constant 0 : index
    %12 = vector.load %arg5[%c0_9, %c0_10] : memref<1x128xf32, #tpu.memory_space<vmem>>, vector<1x128xf32>
    %13 = vector.broadcast %12 : vector<1x128xf32> to vector<8x128xf32>
    %14 = arith.addf %11, %13 : vector<8x128xf32>
    %c0_11 = arith.constant 0 : index
    %c0_12 = arith.constant 0 : index
    %15 = vector.load %arg6[%c0_11, %c0_12] : memref<8x128xf32, #tpu.memory_space<vmem>>, vector<8x128xf32>
    tpu.vector_store %arg6[%c0_11, %c0_12], %14 {strides = array<i32>} : memref<8x128xf32, #tpu.memory_space<vmem>>, vector<8x128xf32>,
    return
  }
  func.func @transform_0(%arg0: i32) -> (i32, i32) {
    %c0_i32 = arith.constant 0 : i32
    %c0_i32_0 = arith.constant 0 : i32
    return %arg0, %c0_i32 : i32, i32
  }
  func.func @transform_1(%arg0: i32) -> (i32, i32) {
    %c0_i32 = arith.constant 0 : i32
    %c0_i32_0 = arith.constant 0 : i32
    %c0_i32_1 = arith.constant 0 : i32
    return %c0_i32, %c0_i32_0 : i32, i32
  }
  func.func @transform_2(%arg0: i32) -> (i32, i32) {
    %c0_i32 = arith.constant 0 : i32
    %c0_i32_0 = arith.constant 0 : i32
    %c0_i32_1 = arith.constant 0 : i32
    return %c0_i32, %c0_i32_0 : i32, i32
  }
  func.func @transform_3(%arg0: i32) -> (i32, i32) {
    %c0_i32 = arith.constant 0 : i32
    %c0_i32_0 = arith.constant 0 : i32
    %c0_i32_1 = arith.constant 0 : i32
    return %c0_i32, %c0_i32_0 : i32, i32
  }
  func.func @transform_4(%arg0: i32) -> (i32, i32) {
    %c0_i32 = arith.constant 0 : i32
    %c0_i32_0 = arith.constant 0 : i32
    %c0_i32_1 = arith.constant 0 : i32
    return %c0_i32, %c0_i32_0 : i32, i32
  }
  func.func @transform_5(%arg0: i32) -> (i32, i32) {
    %c0_i32 = arith.constant 0 : i32
    %c0_i32_0 = arith.constant 0 : i32
    return %arg0, %c0_i32 : i32, i32
  }
}

</mosaic_0001>

<bundles_post_ra>
// kernel: global_net_forward.1
= control target key start
LH: loop header
LB: loop body
LE: loop exit
PB: predicated region body
PF: predicated region fallthrough
CT: control target
= control target key end

     0   :  { %10 = vsyncpa [#allocation3], 0  ;;  %s382_s0 = inlined_call_operand.hbm [shape: f32[8,32], index: 0, kind: input, shape index: {}]   ;;  %s383_s1 = inlined_call_operand.hbm [shape: bf16[32,128], index: 1, kind: input, shape index: {}]   ;;  %s384_s2 = inlined_call_operand.vmem [shape: f32[1,128], index: 2, kind: input, shape index: {}]   ;;  %s385_s3 = inlined_call_operand.hbm [shape: bf16[128,128], index: 3, kind: input, shape index: {}]   ;;  %s386_s4 = inlined_call_operand.vmem [shape: f32[1,128], index: 4, kind: input, shape index: {}]   ;;  %s387_s5 = inlined_call_operand.vmem [shape: f32[8,128], index: 5, kind: output, shape index: {}]  }
   0x1   :  { %11 = vsyncpa [#allocation5], 0  ;;  %s27_s20 = sshll.u32 %s383_s1, 4  ;;  %s329_s21 = smov [#allocation4]   ;;  %s28_s20 = int_to_ptr.hbm [resolvable:$true] %s27_s20 }
   0x2   :  { %s29_s22 = sshll.u32 %s329_s21, 4  ;;  %s17_s25 = sshll.u32 %s382_s0, 4  ;;  %s30_s22 = int_to_ptr.vmem [resolvable:$true] %s29_s22  ;;  %s18_s25 = int_to_ptr.hbm [resolvable:$true] %s17_s25 }
   0x3   :  { %s330_s26 = smov 64   ;;  %s331_s27 = smov 4  }
   0x4   :  { %35 = dma.hbm_to_vmem [thread:$0]  %s28_s20, 256, %s30_s22, [#allocation5], %s330_s26, %s330_s26, %s331_s27  }
   0x5   :  { %s332_s28 = smov [#allocation2]   ;;  %s42_s7 = sshll.u32 %s385_s3, 4  ;;  %s43_s7 = int_to_ptr.hbm [resolvable:$true] %s42_s7 }
   0x6   :  { %s19_s29 = sshll.u32 %s332_s28, 4  ;;  %s333_s1 = smov [#allocation6]   ;;  %s20_s29 = int_to_ptr.vmem [resolvable:$true] %s19_s29 }
   0x7   :  { %22 = dma.hbm_to_vmem [thread:$0]  %s18_s25, 128, %s20_s29, [#allocation3]  }
   0x8   :  { %s44_s8 = sshll.u32 %s333_s1, 4  ;;  %s45_s8 = int_to_ptr.vmem [resolvable:$true] %s44_s8 }
   0x9   :  { %50 = dma.hbm_to_vmem [thread:$0]  %s43_s7, 1024, %s45_s8, [#allocation5], %s330_s26, %s330_s26, %s331_s27  }
   0xa   :  { %325 = dma.done.wait [#allocation3], 128  }
   0xb   :  { %326 = vsyncadd [#allocation3], 4294967168 }
   0xc   :  { %327 = dma.done.wait [#allocation5], 1280  }
   0xd   :  { %328 = vsyncadd [#allocation5], 4294966016  ;;  %v237_v0 = vld [vmem:[#allocation4 + $0x8] sm:$0xff]  ;;  %v236_v2 = vld [vmem:[#allocation4] sm:$0xff]  ;;  %vm88_vm0 = vcmask 261120  }
   0xe   :  { %v245_v1 = vld [vmem:[#allocation6 + $0x38] sm:$0xff]  ;;  %98 = vmatpush.bf16.msra.mxu0 %v237_v0  ;;  %v66_v3 = vld [vmem:[#allocation2] sm:$0xff]  ;;  %v244_v4 = vld [vmem:[#allocation6 + $0x30] sm:$0xff] }
   0xf   :  { %175 = vmatpush.bf16.msra.mxu1 %v245_v1  ;;  %v67_v5 = vpack.c.bf16 %v66_v3, %v66_v3  ;;  %v243_v6 = vld [vmem:[#allocation6 + $0x28] sm:$0xff]  ;;  %v242_v7 = vld [vmem:[#allocation6 + $0x20] sm:$0xff]  ;;  %v241_v8 = vld [vmem:[#allocation6 + $0x18] sm:$0xff] }
  0x10   :  { %v240_v9 = vld [vmem:[#allocation6 + $0x10] sm:$0xff]  ;;  %v239_v10 = vld [vmem:[#allocation6 + $0x8] sm:$0xff]  ;;  %v238_v11 = vld [vmem:[#allocation6] sm:$0xff] }
  0x11   :  { %v251_v12 = vld [vmem:[%s384_s2] ss:$0 sm:$0xff] }
  0x12   :  { %99 = vmatpush.bf16.msra.mxu0 %v236_v2  ;;  %v252_v18 = vld [vmem:[%s386_s4] ss:$0 sm:$0xff] }
  0x13   :  { %176 = vmatpush.bf16.msra.mxu1 %v244_v4 }
  0x15   :  { %203 = vmatmul.msk.bf16.vlgmr.msra.gmra.mxu0 %vm88_vm0, %v67_v5 }
  0x17   :  { %177 = vmatpush.bf16.msra.mxu1 %v243_v6 }
  0x1b   :  { %178 = vmatpush.bf16.msra.mxu1 %v242_v7 }
  0x1f   :  { %179 = vmatpush.bf16.msra.mxu1 %v241_v8 }
  0x23   :  { %180 = vmatpush.bf16.msra.mxu1 %v240_v9 }
  0x27   :  { %181 = vmatpush.bf16.msra.mxu1 %v239_v10 }
  0x2b   :  { %182 = vmatpush.bf16.msra.mxu1 %v238_v11 }
  0x92   :  { %v101_v13 = vpop.f32.mrf.mxu0 }
  0x93   :  { %v102_v14 = vadd.f32 %v251_v12, %v101_v13 }
  0x95   :  { %v105_v15 = vmax.f32 %v102_v14, 0.0 }
  0x97   :  { %v106_v16 = vpack.c.bf16 %v105_v15, %v105_v15 }
  0x99   :  { %183 = vmatmul.bf16.vlgmr.msra.gmra.mxu1 %v106_v16 }
  0x9a   :  { %v103_v17 = vpop.f32.mrf.mxu0 }
 0x116   :  { %v184_v19 = vpop.f32.mrf.mxu1 }
 0x117   :  { %v185_v20 = vadd.f32 %v252_v18, %v184_v19 }
 0x119   :  { %188 = vst [vmem:[%s387_s5] sm:$0xff] %v185_v20 }
 0x11e   :  { %v186_v21 = vpop.f32.mrf.mxu1 }
 0x11f   :  { %193 = vsyncpa [#allocation3], 1 }
 0x120   :  { %194 = vsyncpa [#allocation5], 1 }

</bundles_post_ra>
